<compile_context>
chip_gen: v5e
topology: v5e:2x2
jax: 0.10.0
libtpu: 0.0.40
codegen_flags: <defaults>
</compile_context>

<pallas_src>
import functools
import math

import jax
import jax.numpy as jnp
import numpy as np
from jax.experimental import pallas as pl
from jax.experimental.pallas import tpu as pltpu


def positional_encoder_kernel(x_ref, t_ref, o_ref, *, d_model, scale,
                              neg2ln1e4_over_d):
    # x_ref / o_ref: (row_tile, d_lane) tile, d_lane = g * d_model.
    # t_ref: SMEM (1,) float32 scalar t.
    d_lane = x_ref.shape[-1]
    lane = jax.lax.broadcasted_iota(jnp.int32, (1, d_lane), 1)
    k = lane % d_model                                   # folded lanes repeat pe
    inv_freq = jnp.exp(k.astype(jnp.float32) * neg2ln1e4_over_d)   # 10000**(-2k/D)
    angle = t_ref[0] * inv_freq
    pe = jnp.where(k % 2 == 0, jnp.sin(angle), jnp.cos(angle))     # (1, d_lane), EUP
    o_ref[...] = (x_ref[...].astype(jnp.float32) * scale + pe).astype(o_ref.dtype)


def positional_encoder(x, t, *, row_tile=None, tile_bytes=2 * 1024 * 1024,
                       donate_x=False):
    """x: (..., d_model); t: python/np/jnp scalar. Returns x*sqrt(d_model) + pe(t)."""
    orig_shape = x.shape
    d_model = orig_shape[-1]
    rows = math.prod(orig_shape[:-1]) if len(orig_shape) > 1 else 1

    # Lane densification: fold g rows onto the lane axis when d_model < 128.
    g = 1
    if d_model < 128 and 128 % d_model == 0:
        cand = 128 // d_model
        if rows % cand == 0:
            g = cand
    rows_f = rows // g
    d_lane = d_model * g
    x2 = x.reshape(rows_f, d_lane)          # contiguous row-major fold: free

    # Row tile: dtype-aware byte target (~2 MiB), multiple of 8 sublanes.
    itemsize = jnp.dtype(x.dtype).itemsize
    if row_tile is None:
        row_tile = max(8, (tile_bytes // (itemsize * d_lane)) // 8 * 8)
    if row_tile >= rows_f:
        row_tile = rows_f                   # single full block (full-dim shape is legal)
    grid = (pl.cdiv(rows_f, row_tile),)     # ragged last block handled by Pallas

    t_arr = jnp.asarray(t, dtype=jnp.float32).reshape((1,))

    kernel = functools.partial(
        positional_encoder_kernel,
        d_model=d_model,
        scale=math.sqrt(d_model),
        neg2ln1e4_over_d=-2.0 * math.log(10000.0) / d_model,
    )

    out = pl.pallas_call(
        kernel,
        out_shape=jax.ShapeDtypeStruct((rows_f, d_lane), x.dtype),
        grid=grid,
        in_specs=[
            pl.BlockSpec((row_tile, d_lane), lambda i: (i, 0)),        # streamed x tiles
            pl.BlockSpec(memory_space=pltpu.MemorySpace.SMEM),         # t scalar
        ],
        out_specs=pl.BlockSpec((row_tile, d_lane), lambda i: (i, 0)),
        compiler_params=pltpu.CompilerParams(
            dimension_semantics=("parallel",),     # shard row tiles across v7x TCs
            vmem_limit_bytes=32 * 1024 * 1024,     # ~8 MiB of buffers; v7x/v5e safe
        ),
        input_output_aliases={0: 0} if donate_x else {},
    )(x2, t_arr)

    return out.reshape(orig_shape)


def positional_encoder_ref(x, t, d_model):
    """Exact float64 port of the PyTorch forward."""
    x = np.asarray(x, dtype=np.float64) * math.sqrt(d_model)
    pe = np.zeros(d_model)
    for i in range(0, d_model, 2):
        pe[i] = math.sin(t / 10000 ** (2 * i / d_model))
        pe[i + 1] = math.cos(t / 10000 ** (2 * (i + 1) / d_model))
    return x + pe


if __name__ == "__main__":
    key = jax.random.PRNGKey(0)
    k1, k2 = jax.random.split(key)

    # Case 1: (B, S, D) = (2, 8, 32) -> lane-densified to (4, 128), grid=(1,).
    B, S, D = 2, 8, 32
    t = 5.0
    x1 = jax.random.normal(k1, (B, S, D), dtype=jnp.float32)
    out1 = jax.block_until_ready(positional_encoder(x1, t))
    ref1 = positional_encoder_ref(np.asarray(x1), t, D)
    assert out1.shape == (B, S, D), out1.shape
    diff1 = np.max(np.abs(np.asarray(out1, dtype=np.float64) - ref1))
    assert np.allclose(np.asarray(out1, dtype=np.float64), ref1,
                       atol=1e-4, rtol=1e-4), f"case1 max abs diff {diff1}"

    # Case 2: exercise the ragged (no-pad) multi-step grid:
    # rows=80 -> folded to (20, 128); row_tile=8 -> grid=(3,), partial last block.
    x2 = jax.random.normal(k2, (2, 40, 32), dtype=jnp.float32)
    t2 = 11.0
    out2 = jax.block_until_ready(positional_encoder(x2, t2, row_tile=8))
    ref2 = positional_encoder_ref(np.asarray(x2), t2, 32)
    diff2 = np.max(np.abs(np.asarray(out2, dtype=np.float64) - ref2))
    assert np.allclose(np.asarray(out2, dtype=np.float64), ref2,
                       atol=1e-4, rtol=1e-4), f"case2 max abs diff {diff2}"

    print("KERNEL_OK")
</pallas_src>

<mosaic_0001>
module attributes {stable_mosaic.version = 11 : i64} {
  func.func @positional_encoder_kernel(%arg0: i32, %arg1: memref<4x128xf32, #tpu.memory_space<vmem>>, %arg2: memref<1xf32, #tpu.memory_space<smem>>, %arg3: memref<4x128xf32, #tpu.memory_space<vmem>>) attributes {dimension_semantics = [#tpu.dimension_semantics<parallel>], iteration_bounds = array<i64: 1>, scalar_prefetch = 0 : i64, scratch_operands = 0 : i64, tpu.core_type = #tpu.core_type<tc>, window_params = [{transform_indices = @transform_0, window_bounds = array<i64: 4, 128>}, {transform_indices = @transform_1, window_bounds = array<i64: 1>}, {transform_indices = @transform_2, window_bounds = array<i64: 4, 128>}]} {
    %0 = tpu.iota {dimensions = array<i32: 1>} : vector<1x128xi32>
    %c32_i32 = arith.constant 32 : i32
    %c0_i32 = arith.constant 0 : i32
    %1 = arith.cmpi eq, %c32_i32, %c0_i32 : i32
    %c1_i32 = arith.constant 1 : i32
    %2 = arith.select %1, %c1_i32, %c32_i32 : i32
    %3 = vector.broadcast %2 : i32 to vector<1x128xi32>
    %4 = arith.remsi %0, %3 : vector<1x128xi32>
    %c0_i32_0 = arith.constant 0 : i32
    %5 = vector.broadcast %c0_i32_0 : i32 to vector<1x128xi32>
    %6 = arith.cmpi ne, %4, %5 : vector<1x128xi32>
    %c0_i32_1 = arith.constant 0 : i32
    %7 = vector.broadcast %c0_i32_1 : i32 to vector<1x128xi32>
    %8 = arith.cmpi slt, %4, %7 : vector<1x128xi32>
    %c0_i32_2 = arith.constant 0 : i32
    %9 = arith.cmpi slt, %2, %c0_i32_2 : i32
    %10 = vector.broadcast %9 : i1 to vector<1x128xi1>
    %11 = vector.broadcast %10 : vector<1x128xi1> to vector<1x128xi1>
    %12 = arith.xori %8, %11 : vector<1x128xi1>
    %13 = arith.andi %12, %6 : vector<1x128xi1>
    %14 = vector.broadcast %2 : i32 to vector<1x128xi32>
    %15 = arith.addi %4, %14 : vector<1x128xi32>
    %16 = arith.select %13, %15, %4 : vector<1x128xi1>, vector<1x128xi32>
    %17 = arith.sitofp %16 : vector<1x128xi32> to vector<1x128xf32>
    %cst = arith.constant -0.575646281 : f32
    %18 = vector.broadcast %cst : f32 to vector<1x128xf32>
    %19 = arith.mulf %17, %18 : vector<1x128xf32>
    %20 = math.exp %19 : vector<1x128xf32>
    %c0 = arith.constant 0 : index
    %21 = memref.load %arg2[%c0] : memref<1xf32, #tpu.memory_space<smem>>
    %22 = vector.broadcast %21 : f32 to vector<1x128xf32>
    %23 = arith.mulf %22, %20 : vector<1x128xf32>
    %c2_i32 = arith.constant 2 : i32
    %c0_i32_3 = arith.constant 0 : i32
    %24 = arith.cmpi eq, %c2_i32, %c0_i32_3 : i32
    %c1_i32_4 = arith.constant 1 : i32
    %25 = arith.select %24, %c1_i32_4, %c2_i32 : i32
    %26 = vector.broadcast %25 : i32 to vector<1x128xi32>
    %27 = arith.remsi %16, %26 : vector<1x128xi32>
    %c0_i32_5 = arith.constant 0 : i32
    %28 = vector.broadcast %c0_i32_5 : i32 to vector<1x128xi32>
    %29 = arith.cmpi ne, %27, %28 : vector<1x128xi32>
    %c0_i32_6 = arith.constant 0 : i32
    %30 = vector.broadcast %c0_i32_6 : i32 to vector<1x128xi32>
    %31 = arith.cmpi slt, %27, %30 : vector<1x128xi32>
    %c0_i32_7 = arith.constant 0 : i32
    %32 = arith.cmpi slt, %25, %c0_i32_7 : i32
    %33 = vector.broadcast %32 : i1 to vector<1x128xi1>
    %34 = vector.broadcast %33 : vector<1x128xi1> to vector<1x128xi1>
    %35 = arith.xori %31, %34 : vector<1x128xi1>
    %36 = arith.andi %35, %29 : vector<1x128xi1>
    %37 = vector.broadcast %25 : i32 to vector<1x128xi32>
    %38 = arith.addi %27, %37 : vector<1x128xi32>
    %39 = arith.select %36, %38, %27 : vector<1x128xi1>, vector<1x128xi32>
    %c0_i32_8 = arith.constant 0 : i32
    %40 = vector.broadcast %c0_i32_8 : i32 to vector<1x128xi32>
    %41 = arith.cmpi eq, %39, %40 : vector<1x128xi32>
    %42 = math.sin %23 : vector<1x128xf32>
    %43 = math.cos %23 : vector<1x128xf32>
    %44 = arith.select %41, %42, %43 : vector<1x128xi1>, vector<1x128xf32>
    %c0_9 = arith.constant 0 : index
    %c0_10 = arith.constant 0 : index
    %45 = vector.load %arg1[%c0_9, %c0_10] : memref<4x128xf32, #tpu.memory_space<vmem>>, vector<4x128xf32>
    %cst_11 = arith.constant 5.65685415 : f32
    %46 = vector.broadcast %cst_11 : f32 to vector<4x128xf32>
    %47 = arith.mulf %45, %46 : vector<4x128xf32>
    %48 = vector.broadcast %44 : vector<1x128xf32> to vector<4x128xf32>
    %49 = arith.addf %47, %48 : vector<4x128xf32>
    %c0_12 = arith.constant 0 : index
    %c0_13 = arith.constant 0 : index
    %50 = vector.load %arg3[%c0_12, %c0_13] : memref<4x128xf32, #tpu.memory_space<vmem>>, vector<4x128xf32>
    tpu.vector_store %arg3[%c0_12, %c0_13], %49 {strides = array<i32>} : memref<4x128xf32, #tpu.memory_space<vmem>>, vector<4x128xf32>,
    return
  }
  func.func @transform_0(%arg0: i32) -> (i32, i32) {
    %c0_i32 = arith.constant 0 : i32
    %c0_i32_0 = arith.constant 0 : i32
    return %arg0, %c0_i32 : i32, i32
  }
  func.func @transform_1(%arg0: i32) -> i32 {
    %c0_i32 = arith.constant 0 : i32
    %c0_i32_0 = arith.constant 0 : i32
    return %c0_i32 : i32
  }
  func.func @transform_2(%arg0: i32) -> (i32, i32) {
    %c0_i32 = arith.constant 0 : i32
    %c0_i32_0 = arith.constant 0 : i32
    return %arg0, %c0_i32 : i32, i32
  }
}

</mosaic_0001>

<bundles_post_ra>
// kernel: tpu_custom_call.1
= control target key start
LH: loop header
LB: loop body
LE: loop exit
PB: predicated region body
PF: predicated region fallthrough
CT: control target
= control target key end

     0   :  { %8 = vsyncpa [#allocation4], 0  ;;  %s547_s0 = inlined_call_operand.hbm [shape: f32[4,128], index: 0, kind: input, shape index: {}]   ;;  %s548_s1 = inlined_call_operand.<no memory space> [shape: f32[1], index: 1, kind: input, shape index: {}]   ;;  %s549_s2 = inlined_call_operand.hbm [shape: f32[4,128], index: 2, kind: output, shape index: {}]  }
   0x1   :  { %9 = vsyncpa [#allocation5], 0  ;;  %s15_s11 = sshll.u32 %s547_s0, 4  ;;  %s461_s12 = smov [#allocation3]   ;;  %s16_s11 = int_to_ptr.hbm [resolvable:$true] %s15_s11 }
   0x2   :  { %s17_s13 = sshll.u32 %s461_s12, 4  ;;  %s18_s13 = int_to_ptr.vmem [resolvable:$true] %s17_s13 }
   0x3   :  { %20 = dma.hbm_to_vmem [thread:$0]  %s16_s11, 64, %s18_s13, [#allocation4]  }
   0x4   :  { %457 = dma.done.wait [#allocation4], 64  }
   0x5   :  { %458 = vsyncadd [#allocation4], 4294967232  ;;  %v27_v0 = vlaneseq  ;;  %v46_v6 = vstv %s548_s1  ;;  %v462_v20 = vmov 683565275   ;;  %v463_v22 = vmov 2475754826  }
   0x6   :  { %v464_v24 = vmov 2131351028   ;;  %v465_v26 = vmov 2102212464   ;;  %v466_v28 = vmov 920167782  }
   0x7   :  { %v488_v1 = vand.u32 127, %v27_v0  ;;  %v467_v34 = vmov 1326507024   ;;  %s469_s1 = smov [#allocation6]   ;;  %s382_s18 = sshll.u32 %s549_s2, 4  ;;  %s383_s18 = int_to_ptr.hbm [resolvable:$true] %s382_s18 }
   0x8   :  { %s380_s15 = sshll.u32 %s469_s1, 4  ;;  %s381_s15 = int_to_ptr.vmem [resolvable:$true] %s380_s15 }
   0x9   :  { %v33_v2 = vand.u32 31, %v488_v1 }
   0xb   :  { %v41_v3 = vcvt.s32.f32 %v33_v2 }
   0xd   :  { %v42_v4 = vmul.f32 -0.5756463, %v41_v3 }
   0xf   :  { %v43_v5 = vmul.f32 1.442695, %v42_v4 }
  0x11   :  { %407 = vpow2.f32 %v43_v5 }
  0x17   :  { %v408_v7 = vpop.eup %407 }
  0x18   :  { %v496_v8 = vmul.f32 %v408_v7, %v46_v6 }
  0x1a   :  { %v64_v9 = vand.u32 2139095040, %v496_v8  ;;  %v61_v11 = vand.u32 2147483647, %v496_v8  ;;  %vm63_vm12 = vcmp.lt.s32.totalorder %v496_v8, 0 }
  0x1c   :  { %v65_v10 = vshrl.u32 %v64_v9, 23  ;;  %v68_v14 = vand.u32 8388607, %v61_v11  ;;  %vm62_vm13 = vcmp.le.f32.partialorder %v61_v11, 0.7853982 }
  0x1e   :  { %v392_v12 = vadd.s32 4294967169, %v65_v10  ;;  %v69_v17 = vor.u32 8388608, %v68_v14 }
  0x20   :  { %v71_v13 = vadd.s32 1, %v392_v12  ;;  %v505_v36 = vshll.u32 %v69_v17, 8  ;;  %v468_v12 = vmov 0  }
  0x22   :  { %vm72_vm0 = vcmp.gt.s32.totalorder %v71_v13, 0  ;;  %v110_v48 = vand.u32 65535, %v505_v36  ;;  %v111_v49 = vshrl.u32 %v505_v36, 16 }
  0x23   :  { %v73_v15 = vsel %vm72_vm0, %v71_v13, 0 }
  0x24   :  { %v75_v16 = vand.u32 31, %v73_v15  ;;  %v502_v18 = vshrl.u32 %v73_v15, 5 }
  0x26   :  { %v76_v19 = vsub.s32 32, %v75_v16  ;;  %v78_v21 = vshll.u32 %v462_v20, %v75_v16  ;;  %v81_v23 = vshll.u32 %v463_v22, %v75_v16  ;;  %v84_v25 = vshll.u32 %v464_v24, %v75_v16 }
  0x27   :  { %v87_v27 = vshll.u32 %v465_v26, %v75_v16  ;;  %v90_v29 = vshll.u32 %v466_v28, %v75_v16  ;;  %vm93_vm1 = vcmp.lt.s32.totalorder %v502_v18, 1  ;;  %vm96_vm2 = vcmp.lt.s32.totalorder %v502_v18, 4 }
  0x28   :  { %v79_v30 = vshrl.u32 %v463_v22, %v76_v19  ;;  %v82_v31 = vshrl.u32 %v464_v24, %v76_v19  ;;  %v85_v32 = vshrl.u32 %v465_v26, %v76_v19  ;;  %v88_v33 = vshrl.u32 %v466_v28, %v76_v19 }
  0x29   :  { %v91_v35 = vshrl.u32 %v467_v34, %v76_v19  ;;  %vm95_vm3 = vcmp.lt.s32.totalorder %v502_v18, 3  ;;  %vm94_vm4 = vcmp.lt.s32.totalorder %v502_v18, 2  ;;  %v77_v56 = vshrl.u32 %v462_v20, %v76_v19 }
  0x2a   :  { %v80_v37 = vor.u32 %v79_v30, %v78_v21  ;;  %v83_v38 = vor.u32 %v82_v31, %v81_v23  ;;  %v86_v39 = vor.u32 %v85_v32, %v84_v25  ;;  %v89_v40 = vor.u32 %v88_v33, %v87_v27 }
  0x2b   :  { %v92_v41 = vor.u32 %v91_v35, %v90_v29 }
  0x2c   :  { %v101_v42 = vsel %vm93_vm1, %v80_v37, %v83_v38  ;;  %v105_v43 = vsel %vm93_vm1, %v83_v38, %v86_v39  ;;  %v102_v44 = vsel %vm96_vm2, %v89_v40, 920167782  ;;  %v97_v7 = vsel %vm93_vm1, %v77_v56, %v80_v37 }
  0x2d   :  { %v106_v45 = vsel %vm96_vm2, %v92_v41, 1326507024  ;;  %v103_v46 = vsel %vm95_vm3, %v86_v39, %v102_v44  ;;  %v98_v10 = vsel %vm96_vm2, %v86_v39, 2102212464 }
  0x2e   :  { %v107_v47 = vsel %vm95_vm3, %v89_v40, %v106_v45  ;;  %v104_v50 = vsel %vm94_vm4, %v101_v42, %v103_v46  ;;  %v99_v22 = vsel %vm95_vm3, %v83_v38, %v98_v10 }
  0x2f   :  { %v108_v51 = vsel %vm94_vm4, %v105_v43, %v107_v47  ;;  %v134_v54 = vand.u32 65535, %v104_v50  ;;  %v135_v55 = vshrl.u32 %v104_v50, 16  ;;  %v100_v30 = vsel %vm94_vm4, %v97_v7, %v99_v22 }
  0x30   :  { %v112_v52 = vand.u32 65535, %v108_v51  ;;  %v113_v53 = vshrl.u32 %v108_v51, 16  ;;  %v154_v34 = vmul.u32 %v505_v36, %v100_v30  ;;  %vm204_vm4 = vweird.f32 %v496_v8 }
  0x31   :  { %v136_v60 = vmul.u32 %v134_v54, %v110_v48  ;;  %v137_v61 = vmul.u32 %v135_v55, %v110_v48  ;;  %v138_v62 = vmul.u32 %v134_v54, %v111_v49  ;;  %v139_v4 = vmul.u32 %v135_v55, %v111_v49 }
  0x32   :  { %v114_v57 = vmul.u32 %v112_v52, %v110_v48  ;;  %v115_v58 = vmul.u32 %v113_v53, %v110_v48  ;;  %v116_v59 = vmul.u32 %v112_v52, %v111_v49  ;;  %v117_v63 = vmul.u32 %v113_v53, %v111_v49 }
  0x33   :  { %v140_v5 = vshll.u32 %v137_v61, 16  ;;  %v142_v6 = vshll.u32 %v138_v62, 16  ;;  %v141_v20 = vshrl.u32 %v137_v61, 16  ;;  %v143_v26 = vshrl.u32 %v138_v62, 16 }
  0x34   :  { %v118_v0 = vshll.u32 %v115_v58, 16  ;;  %v120_v3 = vshll.u32 %v116_v59, 16  ;;  %v119_v15 = vshrl.u32 %v115_v58, 16  ;;  %v121_v23 = vshrl.u32 %v116_v59, 16 }
  0x35   :  { %vm144_vm6 = vc.u32 %v136_v60, %v140_v5  ;;  %v146_v14 = vadd.s32 %v140_v5, %v136_v60 }
  0x36   :  { %vm122_vm5 = vc.u32 %v114_v57, %v118_v0  ;;  %v124_v9 = vadd.s32 %v118_v0, %v114_v57  ;;  %v145_v17 = vsel %vm144_vm6, 1, %v468_v12 }
  0x37   :  { %v123_v13 = vsel %vm122_vm5, 1, %v468_v12  ;;  %v147_v21 = vadd.s32 %v145_v17, %v139_v4  ;;  %vm148_vm8 = vc.u32 %v146_v14, %v142_v6  ;;  %v150_v29 = vadd.s32 %v146_v14, %v142_v6 }
  0x38   :  { %v125_v16 = vadd.s32 %v123_v13, %v117_v63  ;;  %vm126_vm7 = vc.u32 %v124_v9, %v120_v3  ;;  %v149_v25 = vsel %vm148_vm8, 1, %v468_v12 }
  0x39   :  { %v127_v19 = vsel %vm126_vm7, 1, %v468_v12  ;;  %v151_v27 = vadd.s32 %v149_v25, %v147_v21 }
  0x3a   :  { %v129_v24 = vadd.s32 %v127_v19, %v125_v16 }
  0x3b   :  { %v152_v31 = vadd.s32 %v151_v27, %v141_v20  ;;  %v52_v20 = vand.u32 1, %v33_v2 }
  0x3c   :  { %v130_v28 = vadd.s32 %v129_v24, %v119_v15 }
  0x3d   :  { %v153_v33 = vadd.s32 %v152_v31, %v143_v26  ;;  %vm60_vm5 = vcmp.eq.s32.totalorder %v52_v20, 0 }
  0x3e   :  { %v131_v32 = vadd.s32 %v130_v28, %v121_v23  ;;  %v371_v23 = vld [vmem:[#allocation3] sm:$0xf] }
  0x3f   :  { %v157_v35 = vadd.s32 1, %v153_v33 }
  0x40   :  { %vm156_vm9 = vc.u32 %v131_v32, %v150_v29  ;;  %v155_v18 = vadd.s32 %v150_v29, %v131_v32  ;;  %v372_v29 = vmul.f32 5.656854, %v371_v23 }
  0x41   :  { %v158_v37 = vsel %vm156_vm9, %v157_v35, %v153_v33 }
  0x42   :  { %v159_v39 = vadd.s32 %v158_v37, %v154_v34 }
  0x44   :  { %v160_v38 = vadd.s32 536870912, %v159_v39 }
  0x46   :  { %v161_v40 = vshrl.u32 %v160_v38, 30 }
  0x48   :  { %v162_v41 = vshll.u32 %v161_v40, 30  ;;  %v185_v58 = vsub.s32 4, %v161_v40 }
  0x4a   :  { %v163_v42 = vsub.s32 %v159_v39, %v162_v41  ;;  %v186_v61 = vsel %vm63_vm12, %v185_v58, %v161_v40 }
  0x4b   :  { %v188_v0 = vsel %vm62_vm13, 0, %v186_v61 }
  0x4c   :  { %vm164_vm10 = vcmp.lt.s32.totalorder %v163_v42, 0  ;;  %v165_v43 = vsub.s32 0, %v163_v42  ;;  %v205_v7 = vadd.s32 3, %v188_v0  ;;  %v360_v15 = vand.u32 3, %v188_v0 }
  0x4e   :  { %v166_v44 = vsel %vm164_vm10, %v165_v43, %v163_v42  ;;  %v206_v14 = vand.u32 3, %v205_v7  ;;  %vm365_vm15 = vcmp.eq.s32.totalorder %v360_v15, 2  ;;  %vm362_vm2 = vcmp.eq.s32.totalorder %v360_v15, 0 }
  0x4f   :  { %v167_v45 = vclz %v166_v44  ;;  %vm361_vm3 = vcmp.lt.s32.totalorder %v360_v15, 2 }
  0x50   :  { %vm211_vm14 = vcmp.eq.s32.totalorder %v206_v14, 2  ;;  %vm207_vm0 = vcmp.lt.s32.totalorder %v206_v14, 2  ;;  %vm208_vm1 = vcmp.eq.s32.totalorder %v206_v14, 0 }
  0x51   :  { %v393_v46 = vadd.s32 4294967294, %v167_v45 }
  0x53   :  { %vm394_vm11 = vcmp.lt.s32.totalorder %v393_v46, 0 }
  0x54   :  { %v170_v47 = vsel %vm394_vm11, 0, %v393_v46 }
  0x55   :  { %v171_v48 = vsub.s32 32, %v170_v47  ;;  %v172_v49 = vshll.u32 %v163_v42, %v170_v47  ;;  %v175_v50 = vsub.s32 4294967266, %v170_v47 }
  0x57   :  { %v173_v36 = vshrl.u32 %v155_v18, %v171_v48  ;;  %v176_v51 = vadd.s32 127, %v175_v50 }
  0x59   :  { %v174_v52 = vor.u32 %v173_v36, %v172_v49  ;;  %v177_v53 = vshll.u32 %v176_v51, 23 }
  0x5b   :  { %v178_v54 = vor.u32 4788187, %v177_v53  ;;  %v181_v55 = vcvt.s32.f32 %v174_v52 }
  0x5d   :  { %v179_v56 = vand.u32 2147483647, %v178_v54 }
  0x5f   :  { %v182_v57 = vmul.f32 %v181_v55, %v179_v56 }
  0x61   :  { %v183_v59 = vxor.u32 2147483648, %v182_v57 }
  0x63   :  { %v184_v60 = vsel %vm63_vm12, %v183_v59, %v182_v57 }
  0x64   :  { %v187_v62 = vsel %vm62_vm13, %v496_v8, %v184_v60 }
  0x65   :  { %v189_v63 = vmul.f32 %v187_v62, %v187_v62 }
  0x67   :  { %v190_v3 = vmul.f32 -0.001358992, %v189_v63  ;;  %v197_v4 = vmul.f32 -0.00019511016, %v189_v63 }
  0x69   :  { %v191_v5 = vadd.f32 0.041655596, %v190_v3  ;;  %v198_v6 = vadd.f32 0.008332121, %v197_v4 }
  0x6b   :  { %v192_v9 = vmul.f32 %v191_v5, %v189_v63  ;;  %v199_v10 = vmul.f32 %v198_v6, %v189_v63 }
  0x6d   :  { %v193_v12 = vadd.f32 -0.4999988, %v192_v9  ;;  %v200_v13 = vadd.f32 -0.16666654, %v199_v10 }
  0x6f   :  { %v194_v16 = vmul.f32 %v193_v12, %v189_v63  ;;  %v201_v11 = vmul.f32 %v200_v13, %v189_v63 }
  0x71   :  { %v195_v17 = vadd.f32 1.0, %v194_v16  ;;  %v202_v19 = vadd.f32 1.0, %v201_v11 }
  0x73   :  { %v203_v21 = vmul.f32 %v202_v19, %v187_v62  ;;  %v212_v22 = vxor.u32 2147483648, %v195_v17 }
  0x75   :  { %v209_v24 = vxor.u32 2147483648, %v203_v21  ;;  %v213_v25 = vsel %vm211_vm14, %v212_v22, %v203_v21  ;;  %v367_v26 = vsel %vm365_vm15, %v212_v22, %v203_v21 }
  0x77   :  { %v210_v27 = vsel %vm208_vm1, %v195_v17, %v209_v24  ;;  %v364_v28 = vsel %vm362_vm2, %v195_v17, %v209_v24 }
  0x78   :  { %v214_v30 = vsel %vm207_vm0, %v210_v27, %v213_v25  ;;  %v368_v31 = vsel %vm361_vm3, %v364_v28, %v367_v26 }
  0x79   :  { %v215_v1 = vsel %vm204_vm4, nan, %v214_v30  ;;  %v369_v2 = vsel %vm204_vm4, nan, %v368_v31 }
  0x7a   :  { %v370_v32 = vsel %vm60_vm5, %v215_v1, %v369_v2 }
  0x7b   :  { %v373_v33 = vadd.f32 %v372_v29, %v370_v32 }
  0x7d   :  { %374 = vst [vmem:[#allocation6] sm:$0xf] %v373_v33 }
  0x7e   :  { %385 = dma.vmem_to_hbm [thread:$0]  %s381_s15, 64, %s383_s18, [#allocation5]  }
  0x7f   :  { %459 = dma.done.wait [#allocation5], 64  }
  0x80   :  { %460 = vsyncadd [#allocation5], 4294967232 }
  0x81   :  { %390 = vsyncpa [#allocation4], 1 }
  0x82   :  { %391 = vsyncpa [#allocation5], 1 }

</bundles_post_ra>
